<compile_context>
chip_gen: v7x
topology: tpu7x:2x2x1
jax: 0.10.0
libtpu: 0.0.40
codegen_flags: <defaults>
</compile_context>

<pallas_src>
import jax
import jax.numpy as jnp
from jax.experimental import pallas as pl
from jax.experimental.pallas import tpu as pltpu

HIDDEN = 256   # fixed by the module: Linear(ob_dim,256) -> Linear(256,256) -> Linear(256,act_dim)
LANES = 128    # TPU vreg lane width


def _actor_kernel(x_ref, w1_ref, b1_ref, w2_ref, b2_ref, w3_ref, b3_ref,
                  ah_ref, out_ref):
    """Fused 3-layer MLP forward on one batch tile (all weights resident in VMEM).

    Dots may run with bf16 operands (MXU fast path) but always accumulate in
    f32; bias add / ReLU / tanh / a_high scale stay strictly in f32.
    """
    x = x_ref[...]

    # Layer 1: Linear + ReLU   (K is zero-padded to 128 lanes -> no-op columns)
    h = jnp.dot(x, w1_ref[...], preferred_element_type=jnp.float32) + b1_ref[...]
    h = jnp.maximum(h, 0.0)

    # Layer 2: Linear + ReLU
    h = jnp.dot(h.astype(w2_ref.dtype), w2_ref[...],
                preferred_element_type=jnp.float32) + b2_ref[...]
    h = jnp.maximum(h, 0.0)

    # Layer 3: Linear + Tanh, scaled by a_high.
    # Padded output columns have zero W3/b3 -> tanh(0) * a_high = 0, sliced away.
    o = jnp.dot(h.astype(w3_ref.dtype), w3_ref[...],
                preferred_element_type=jnp.float32) + b3_ref[...]
    out_ref[...] = (jnp.tanh(o) * ah_ref[...]).astype(out_ref.dtype)


def _round_up(x, m):
    return ((x + m - 1) // m) * m


def actor_forward(ob, params, a_high, *, batch_tile=None,
                  matmul_dtype=jnp.bfloat16):
    """ob: (B, ob_dim) float32. Returns (B, act_dim) float32.

    matmul_dtype casts only the dot operands (ob, W1, W2, W3); accumulation and
    the bias/ReLU/tanh epilogue remain f32. Pass None (or float32) for the
    full-precision path.
    """
    w1, b1, w2, b2, w3, b3 = params
    B, ob_dim = ob.shape
    act_dim = w3.shape[1]

    if matmul_dtype is not None:
        ob = ob.astype(matmul_dtype)
        w1 = w1.astype(matmul_dtype)
        w2 = w2.astype(matmul_dtype)
        w3 = w3.astype(matmul_dtype)

    # ---- lane padding (zero): layer-1 K and the output dim -> 128-wide ----
    K_PAD = _round_up(ob_dim, LANES)
    OUT_PAD = _round_up(act_dim, LANES)
    if K_PAD != ob_dim:
        w1 = jnp.pad(w1, ((0, K_PAD - ob_dim), (0, 0)))
    if OUT_PAD != act_dim:
        w3 = jnp.pad(w3, ((0, 0), (0, OUT_PAD - act_dim)))
        b3 = jnp.pad(b3, ((0, 0), (0, OUT_PAD - act_dim)))

    # a_high: scalar or per-dimension vector -> (1, OUT_PAD) f32 operand.
    a_vec = jnp.broadcast_to(
        jnp.asarray(a_high, dtype=jnp.float32).reshape(-1), (act_dim,))
    a_vec = jnp.pad(a_vec, (0, OUT_PAD - act_dim)).reshape(1, OUT_PAD)

    # ---- batch tiling ----
    # Sublane packing: 8 rows/vreg for f32, 16 for bf16.
    sublane = 16 if ob.dtype == jnp.bfloat16 else 8
    if batch_tile is None:
        bp = _round_up(B, sublane)
        if bp <= 512:
            batch_tile = bp                                   # single grid step
        else:
            # >= 2 "parallel" steps (one per v7x TensorCore), capped at 1024
            # rows so per-step VMEM stays ~1-2 MiB on every generation.
            batch_tile = min(1024, _round_up((bp + 1) // 2, sublane))
    batch_tile = _round_up(batch_tile, sublane)

    Bp = _round_up(B, batch_tile)
    pad_rows = Bp - B
    pad_cols = K_PAD - ob_dim
    if pad_rows or pad_cols:
        ob = jnp.pad(ob, ((0, pad_rows), (0, pad_cols)))

    grid = (Bp // batch_tile,)

    # Advisory cost hint for XLA's scheduler.
    flops = 2 * Bp * (K_PAD * HIDDEN + HIDDEN * HIDDEN + HIDDEN * OUT_PAD)
    bytes_accessed = (
        int(ob.size) * ob.dtype.itemsize
        + sum(int(p.size) * p.dtype.itemsize for p in (w1, b1, w2, b2, w3, b3))
        + int(a_vec.size) * 4 + Bp * OUT_PAD * 4)
    cost = pl.CostEstimate(flops=flops, transcendentals=Bp * OUT_PAD,
                           bytes_accessed=bytes_accessed)

    out_shape = jax.ShapeDtypeStruct((Bp, OUT_PAD), jnp.float32)

    out = pl.pallas_call(
        _actor_kernel,
        out_shape=out_shape,
        grid_spec=pltpu.PrefetchScalarGridSpec(
            num_scalar_prefetch=0,
            grid=grid,
            in_specs=[
                pl.BlockSpec((batch_tile, K_PAD), lambda i: (i, 0)),   # ob tile
                pl.BlockSpec((K_PAD, HIDDEN), lambda i: (0, 0)),       # W1
                pl.BlockSpec((1, HIDDEN), lambda i: (0, 0)),           # b1
                pl.BlockSpec((HIDDEN, HIDDEN), lambda i: (0, 0)),      # W2
                pl.BlockSpec((1, HIDDEN), lambda i: (0, 0)),           # b2
                pl.BlockSpec((HIDDEN, OUT_PAD), lambda i: (0, 0)),     # W3
                pl.BlockSpec((1, OUT_PAD), lambda i: (0, 0)),          # b3
                pl.BlockSpec((1, OUT_PAD), lambda i: (0, 0)),          # a_high
            ],
            out_specs=pl.BlockSpec((batch_tile, OUT_PAD), lambda i: (i, 0)),
        ),
        compiler_params=pltpu.CompilerParams(
            dimension_semantics=("parallel",)),
        cost_estimate=cost,
    )(ob, w1, b1, w2, b2, w3, b3, a_vec)

    return out[:B, :act_dim]


def init_actor_params(key, ob_dim, act_dim):
    """Deterministic xavier_normal_ weights, uniform biases (nn.Linear default)."""
    k1, k2, k3, kb1, kb2, kb3 = jax.random.split(key, 6)

    def xavier_normal(k, fan_in, fan_out):
        std = jnp.sqrt(2.0 / (fan_in + fan_out))
        # stored as (in, out) so the kernel does x @ W
        return std * jax.random.normal(k, (fan_in, fan_out), dtype=jnp.float32)

    def linear_bias(k, fan_in, fan_out):
        bound = 1.0 / jnp.sqrt(fan_in)
        return jax.random.uniform(k, (1, fan_out), dtype=jnp.float32,
                                  minval=-bound, maxval=bound)

    w1 = xavier_normal(k1, ob_dim, HIDDEN)
    b1 = linear_bias(kb1, ob_dim, HIDDEN)
    w2 = xavier_normal(k2, HIDDEN, HIDDEN)
    b2 = linear_bias(kb2, HIDDEN, HIDDEN)
    w3 = xavier_normal(k3, HIDDEN, act_dim)
    b3 = linear_bias(kb3, HIDDEN, act_dim)
    return (w1, b1, w2, b2, w3, b3)


def actor_forward_ref(ob, params, a_high):
    w1, b1, w2, b2, w3, b3 = params
    h = jnp.maximum(ob @ w1 + b1, 0.0)
    h = jnp.maximum(h @ w2 + b2, 0.0)
    return jnp.tanh(h @ w3 + b3) * a_high


# TODO(synk): explore(), soft_update(), copy() are training-time utilities
# (noise injection / Polyak averaging), not part of forward(); left in pure JAX.


if __name__ == "__main__":
    key = jax.random.PRNGKey(0)
    k_params, k_ob = jax.random.split(key)

    # Small, DDPG-like shapes: batch=2 observations of dim 8, 4-dim action.
    B, ob_dim, act_dim = 2, 8, 4
    a_high = 2.0  # config.a_high

    params = init_actor_params(k_params, ob_dim, act_dim)
    ob = jax.random.normal(k_ob, (B, ob_dim), dtype=jnp.float32)

    ref = actor_forward_ref(ob, params, a_high)

    # Default path: bf16 MXU operands, f32 accumulate / f32 epilogue.
    out = actor_forward(ob, params, a_high)
    out = jax.block_until_ready(out)
    assert out.shape == (B, act_dim), out.shape
    assert jnp.allclose(out, ref, atol=5e-2, rtol=5e-2), (out, ref)

    # Reference-precision f32 path (tight tolerance).
    out_f32 = actor_forward(ob, params, a_high, matmul_dtype=None)
    out_f32 = jax.block_until_ready(out_f32)
    assert out_f32.shape == (B, act_dim), out_f32.shape
    assert jnp.allclose(out_f32, ref, atol=1e-5, rtol=1e-5), (out_f32, ref)

    # Larger batch exercises the multi-step "parallel" grid path.
    B2 = 2048
    ob2 = jax.random.normal(jax.random.PRNGKey(1), (B2, ob_dim), dtype=jnp.float32)
    ref2 = actor_forward_ref(ob2, params, a_high)
    out2 = jax.block_until_ready(actor_forward(ob2, params, a_high))
    assert out2.shape == (B2, act_dim), out2.shape
    assert jnp.allclose(out2, ref2, atol=5e-2, rtol=5e-2)

    print("KERNEL_OK")
</pallas_src>

<mosaic_0001>
module attributes {stable_mosaic.version = 11 : i64} {
  func.func @_actor_kernel(%arg0: i32, %arg1: memref<16x128xbf16, #tpu.memory_space<vmem>>, %arg2: memref<128x256xbf16, #tpu.memory_space<vmem>>, %arg3: memref<1x256xf32, #tpu.memory_space<vmem>>, %arg4: memref<256x256xbf16, #tpu.memory_space<vmem>>, %arg5: memref<1x256xf32, #tpu.memory_space<vmem>>, %arg6: memref<256x128xbf16, #tpu.memory_space<vmem>>, %arg7: memref<1x128xf32, #tpu.memory_space<vmem>>, %arg8: memref<1x128xf32, #tpu.memory_space<vmem>>, %arg9: memref<16x128xf32, #tpu.memory_space<vmem>>) attributes {dimension_semantics = [#tpu.dimension_semantics<parallel>], iteration_bounds = array<i64: 1>, scalar_prefetch = 0 : i64, scratch_operands = 0 : i64, tpu.core_type = #tpu.core_type<tc>, window_params = [{transform_indices = @transform_0, window_bounds = array<i64: 16, 128>}, {pipeline_mode = #tpu.pipeline_mode<synchronous>, transform_indices = @transform_1, window_bounds = array<i64: 128, 256>}, {pipeline_mode = #tpu.pipeline_mode<synchronous>, transform_indices = @transform_2, window_bounds = array<i64: 1, 256>}, {pipeline_mode = #tpu.pipeline_mode<synchronous>, transform_indices = @transform_3, window_bounds = array<i64: 256, 256>}, {pipeline_mode = #tpu.pipeline_mode<synchronous>, transform_indices = @transform_4, window_bounds = array<i64: 1, 256>}, {pipeline_mode = #tpu.pipeline_mode<synchronous>, transform_indices = @transform_5, window_bounds = array<i64: 256, 128>}, {pipeline_mode = #tpu.pipeline_mode<synchronous>, transform_indices = @transform_6, window_bounds = array<i64: 1, 128>}, {pipeline_mode = #tpu.pipeline_mode<synchronous>, transform_indices = @transform_7, window_bounds = array<i64: 1, 128>}, {transform_indices = @transform_8, window_bounds = array<i64: 16, 128>}]} {
    %c0 = arith.constant 0 : index
    %c0_0 = arith.constant 0 : index
    %0 = vector.load %arg1[%c0, %c0_0] : memref<16x128xbf16, #tpu.memory_space<vmem>>, vector<16x128xbf16>
    %c0_1 = arith.constant 0 : index
    %c0_2 = arith.constant 0 : index
    %1 = vector.load %arg2[%c0_1, %c0_2] : memref<128x256xbf16, #tpu.memory_space<vmem>>, vector<128x256xbf16>
    %cst = arith.constant dense<0.000000e+00> : vector<16x256xf32>
    %2 = tpu.matmul %0, %1, %cst {dimension_numbers = #tpu.dot_dimension_numbers<[1], [0], [0], [1], [0, 0, 1, 1], [], []>} : vector<16x128xbf16>, vector<128x256xbf16>, vector<16x256xf32> -> vector<16x256xf32>
    %c0_3 = arith.constant 0 : index
    %c0_4 = arith.constant 0 : index
    %3 = vector.load %arg3[%c0_3, %c0_4] : memref<1x256xf32, #tpu.memory_space<vmem>>, vector<1x256xf32>
    %4 = vector.broadcast %3 : vector<1x256xf32> to vector<16x256xf32>
    %5 = arith.addf %2, %4 : vector<16x256xf32>
    %cst_5 = arith.constant 0.000000e+00 : f32
    %6 = vector.broadcast %cst_5 : f32 to vector<16x256xf32>
    %7 = arith.maximumf %5, %6 : vector<16x256xf32>
    %8 = arith.truncf %7 : vector<16x256xf32> to vector<16x256xbf16>
    %c0_6 = arith.constant 0 : index
    %c0_7 = arith.constant 0 : index
    %9 = vector.load %arg4[%c0_6, %c0_7] : memref<256x256xbf16, #tpu.memory_space<vmem>>, vector<256x256xbf16>
    %cst_8 = arith.constant dense<0.000000e+00> : vector<16x256xf32>
    %10 = tpu.matmul %8, %9, %cst_8 {dimension_numbers = #tpu.dot_dimension_numbers<[1], [0], [0], [1], [0, 0, 1, 1], [], []>} : vector<16x256xbf16>, vector<256x256xbf16>, vector<16x256xf32> -> vector<16x256xf32>
    %c0_9 = arith.constant 0 : index
    %c0_10 = arith.constant 0 : index
    %11 = vector.load %arg5[%c0_9, %c0_10] : memref<1x256xf32, #tpu.memory_space<vmem>>, vector<1x256xf32>
    %12 = vector.broadcast %11 : vector<1x256xf32> to vector<16x256xf32>
    %13 = arith.addf %10, %12 : vector<16x256xf32>
    %cst_11 = arith.constant 0.000000e+00 : f32
    %14 = vector.broadcast %cst_11 : f32 to vector<16x256xf32>
    %15 = arith.maximumf %13, %14 : vector<16x256xf32>
    %16 = arith.truncf %15 : vector<16x256xf32> to vector<16x256xbf16>
    %c0_12 = arith.constant 0 : index
    %c0_13 = arith.constant 0 : index
    %17 = vector.load %arg6[%c0_12, %c0_13] : memref<256x128xbf16, #tpu.memory_space<vmem>>, vector<256x128xbf16>
    %cst_14 = arith.constant dense<0.000000e+00> : vector<16x128xf32>
    %18 = tpu.matmul %16, %17, %cst_14 {dimension_numbers = #tpu.dot_dimension_numbers<[1], [0], [0], [1], [0, 0, 1, 1], [], []>} : vector<16x256xbf16>, vector<256x128xbf16>, vector<16x128xf32> -> vector<16x128xf32>
    %c0_15 = arith.constant 0 : index
    %c0_16 = arith.constant 0 : index
    %19 = vector.load %arg7[%c0_15, %c0_16] : memref<1x128xf32, #tpu.memory_space<vmem>>, vector<1x128xf32>
    %20 = vector.broadcast %19 : vector<1x128xf32> to vector<16x128xf32>
    %21 = arith.addf %18, %20 : vector<16x128xf32>
    %22 = math.tanh %21 : vector<16x128xf32>
    %c0_17 = arith.constant 0 : index
    %c0_18 = arith.constant 0 : index
    %23 = vector.load %arg8[%c0_17, %c0_18] : memref<1x128xf32, #tpu.memory_space<vmem>>, vector<1x128xf32>
    %24 = vector.broadcast %23 : vector<1x128xf32> to vector<16x128xf32>
    %25 = arith.mulf %22, %24 : vector<16x128xf32>
    %c0_19 = arith.constant 0 : index
    %c0_20 = arith.constant 0 : index
    %26 = vector.load %arg9[%c0_19, %c0_20] : memref<16x128xf32, #tpu.memory_space<vmem>>, vector<16x128xf32>
    tpu.vector_store %arg9[%c0_19, %c0_20], %25 {strides = array<i32>} : memref<16x128xf32, #tpu.memory_space<vmem>>, vector<16x128xf32>,
    return
  }
  func.func @transform_0(%arg0: i32) -> (i32, i32) {
    %c0_i32 = arith.constant 0 : i32
    %c0_i32_0 = arith.constant 0 : i32
    return %arg0, %c0_i32 : i32, i32
  }
  func.func @transform_1(%arg0: i32) -> (i32, i32) {
    %c0_i32 = arith.constant 0 : i32
    %c0_i32_0 = arith.constant 0 : i32
    %c0_i32_1 = arith.constant 0 : i32
    return %c0_i32, %c0_i32_0 : i32, i32
  }
  func.func @transform_2(%arg0: i32) -> (i32, i32) {
    %c0_i32 = arith.constant 0 : i32
    %c0_i32_0 = arith.constant 0 : i32
    %c0_i32_1 = arith.constant 0 : i32
    return %c0_i32, %c0_i32_0 : i32, i32
  }
  func.func @transform_3(%arg0: i32) -> (i32, i32) {
    %c0_i32 = arith.constant 0 : i32
    %c0_i32_0 = arith.constant 0 : i32
    %c0_i32_1 = arith.constant 0 : i32
    return %c0_i32, %c0_i32_0 : i32, i32
  }
  func.func @transform_4(%arg0: i32) -> (i32, i32) {
    %c0_i32 = arith.constant 0 : i32
    %c0_i32_0 = arith.constant 0 : i32
    %c0_i32_1 = arith.constant 0 : i32
    return %c0_i32, %c0_i32_0 : i32, i32
  }
  func.func @transform_5(%arg0: i32) -> (i32, i32) {
    %c0_i32 = arith.constant 0 : i32
    %c0_i32_0 = arith.constant 0 : i32
    %c0_i32_1 = arith.constant 0 : i32
    return %c0_i32, %c0_i32_0 : i32, i32
  }
  func.func @transform_6(%arg0: i32) -> (i32, i32) {
    %c0_i32 = arith.constant 0 : i32
    %c0_i32_0 = arith.constant 0 : i32
    %c0_i32_1 = arith.constant 0 : i32
    return %c0_i32, %c0_i32_0 : i32, i32
  }
  func.func @transform_7(%arg0: i32) -> (i32, i32) {
    %c0_i32 = arith.constant 0 : i32
    %c0_i32_0 = arith.constant 0 : i32
    %c0_i32_1 = arith.constant 0 : i32
    return %c0_i32, %c0_i32_0 : i32, i32
  }
  func.func @transform_8(%arg0: i32) -> (i32, i32) {
    %c0_i32 = arith.constant 0 : i32
    %c0_i32_0 = arith.constant 0 : i32
    return %arg0, %c0_i32 : i32, i32
  }
}

</mosaic_0001>

<bundles_post_ra>
// kernel: tpu_custom_call.1
= control target key start
LH: loop header
LB: loop body
LE: loop exit
PB: predicated region body
PF: predicated region fallthrough
CT: control target
= control target key end

     0   :  { %13 = vsyncpa [#allocation3], 0  ;;  %s1171_s0 = inlined_call_operand.hbm [shape: bf16[16,128], index: 0, kind: input, shape index: {}]   ;;  %s1172_s1 = inlined_call_operand.hbm [shape: bf16[128,256], index: 1, kind: input, shape index: {}]   ;;  %s1173_s2 = inlined_call_operand.vmem [shape: f32[1,256], index: 2, kind: input, shape index: {}]   ;;  %s1174_s3 = inlined_call_operand.hbm [shape: bf16[256,256], index: 3, kind: input, shape index: {}]   ;;  %s1175_s4 = inlined_call_operand.vmem [shape: f32[1,256], index: 4, kind: input, shape index: {}]   ;;  %s1176_s5 = inlined_call_operand.hbm [shape: bf16[256,128], index: 5, kind: input, shape index: {}]   ;;  %s1177_s6 = inlined_call_operand.vmem [shape: f32[1,128], index: 6, kind: input, shape index: {}]   ;;  %s1178_s7 = inlined_call_operand.vmem [shape: f32[1,128], index: 7, kind: input, shape index: {}]   ;;  %s1179_s8 = inlined_call_operand.hbm [shape: f32[16,128], index: 8, kind: output, shape index: {}]  }
   0x1   :  { %14 = vsyncpa [#allocation6], 0 }
   0x2   :  { %15 = vsyncpa [#allocation9], 0 }
   0x3   :  { %16 = vsyncpa [#allocation4], 0  ;;  %s1022_s27 = smov [#allocation5]   ;;  %s904_s9 = scalar_lea.hbm %s1172_s1, 2048 }
   0x4   :  { %s34_s28 = sshll.u32 %s1022_s27, 4  ;;  %p905_p0 = scmp.ne.s32.totalorder %s1172_s1, %s904_s9  ;;  %s35_s28 = int_to_ptr.vmem [resolvable:$true] %s34_s28 }
   0x5   :  { %p908_p1 = scmp.lt.u32.totalorder %s904_s9, %s1172_s1 }
   0x7   :  { %p910_p2 = pnand %p908_p1, %p905_p0 }
   0x9   :  { %913 = shalt.err (!%p910_p2)
}
   0xa   :  { %s914_s14 = scalar_lea.vmem %s35_s28, 2048  ;;  %p919_p4 = scmp.lt.s32.totalorder %s35_s28, %s35_s28 }
   0xb   :  { %p915_p3 = scmp.ne.s32.totalorder %s35_s28, %s914_s14  ;;  %p920_p5 = scmp.lt.s32.totalorder %s914_s14, %s914_s14 }
   0xd   :  { %p921_p6 = por %p920_p5, %p919_p4 }
   0xf   :  { %p922_p7 = pnand %p921_p6, %p915_p3 }
  0x11   :  { %925 = shalt.err (!%p922_p7)
}
  0x12   :  { %s1023_s15 = smov 128   ;;  %s1024_s16 = smov 8  }
  0x13   :  { %40 = dma.hbm_to_vmem [thread:$0]  %s1172_s1, 2048, %s35_s28, [#allocation6], %s1023_s15, %s1023_s15, %s1024_s16  }
  0x14   :  { %s1025_s19 = smov [#allocation2]   ;;  %s926_s23 = scalar_lea.hbm %s1171_s0, 128 }
  0x15   :  { %s22_s20 = sshll.u32 %s1025_s19, 4  ;;  %p927_p8 = scmp.ne.s32.totalorder %s1171_s0, %s926_s23  ;;  %s23_s20 = int_to_ptr.vmem [resolvable:$true] %s22_s20 }
  0x16   :  { %p930_p9 = scmp.lt.u32.totalorder %s926_s23, %s1171_s0 }
  0x18   :  { %p932_p10 = pnand %p930_p9, %p927_p8 }
  0x1a   :  { %935 = shalt.err (!%p932_p10)
}
  0x1b   :  { %s936_s29 = scalar_lea.vmem %s23_s20, 128  ;;  %p941_p12 = scmp.lt.s32.totalorder %s23_s20, %s23_s20 }
  0x1c   :  { %p937_p11 = scmp.ne.s32.totalorder %s23_s20, %s936_s29  ;;  %p942_p13 = scmp.lt.s32.totalorder %s936_s29, %s936_s29 }
  0x1e   :  { %p943_p0 = por %p942_p13, %p941_p12 }
  0x20   :  { %p944_p1 = pnand %p943_p0, %p937_p11 }
  0x22   :  { %947 = shalt.err (!%p944_p1)
}
  0x23   :  { %s1026_s1 = smov 64   ;;  %s1027_s28 = smov 4  }
  0x24   :  { %28 = dma.hbm_to_vmem [thread:$0]  %s1171_s0, 128, %s23_s20, [#allocation3], %s1026_s1, %s1026_s1, %s1027_s28  }
  0x25   :  { %s1028_s10 = smov [#allocation7]   ;;  %s1029_s12 = smov [#allocation8]  }
  0x26   :  { %s48_s11 = sshll.u32 %s1028_s10, 4  ;;  %s62_s13 = sshll.u32 %s1029_s12, 4  ;;  %s49_s11 = int_to_ptr.vmem [resolvable:$true] %s48_s11  ;;  %s1107_s13 = int_to_ptr.vmem [resolvable:$true] %s62_s13 }
  0x27   :  { %s948_s18 = scalar_lea.hbm %s1174_s3, 4096 }
  0x28   :  { %p949_p2 = scmp.ne.s32.totalorder %s1174_s3, %s948_s18  ;;  %p952_p3 = scmp.lt.u32.totalorder %s948_s18, %s1174_s3 }
  0x2a   :  { %p954_p4 = pnand %p952_p3, %p949_p2 }
  0x2c   :  { %957 = shalt.err (!%p954_p4)
}
  0x2d   :  { %s958_s0 = scalar_lea.vmem %s49_s11, 4096  ;;  %p963_p6 = scmp.lt.s32.totalorder %s49_s11, %s49_s11 }
  0x2e   :  { %p959_p5 = scmp.ne.s32.totalorder %s49_s11, %s958_s0  ;;  %p964_p7 = scmp.lt.s32.totalorder %s958_s0, %s958_s0 }
  0x30   :  { %p965_p8 = por %p964_p7, %p963_p6 }
  0x32   :  { %p966_p9 = pnand %p965_p8, %p959_p5 }
  0x34   :  { %969 = shalt.err (!%p966_p9)
}
  0x35   :  { %54 = dma.hbm_to_vmem [thread:$0]  %s1174_s3, 4096, %s49_s11, [#allocation6], %s1023_s15, %s1023_s15, %s1024_s16  }
  0x36   :  { %s970_s27 = scalar_lea.hbm %s1176_s5, 2048 }
  0x37   :  { %p971_p10 = scmp.ne.s32.totalorder %s1176_s5, %s970_s27  ;;  %p974_p11 = scmp.lt.u32.totalorder %s970_s27, %s1176_s5 }
  0x39   :  { %p976_p12 = pnand %p974_p11, %p971_p10 }
  0x3b   :  { %979 = shalt.err (!%p976_p12)
}
  0x3c   :  { %s980_s12 = scalar_lea.vmem %s1107_s13, 2048  ;;  %p985_p0 = scmp.lt.s32.totalorder %s1107_s13, %s1107_s13 }
  0x3d   :  { %p981_p13 = scmp.ne.s32.totalorder %s1107_s13, %s980_s12  ;;  %p986_p1 = scmp.lt.s32.totalorder %s980_s12, %s980_s12 }
  0x3f   :  { %p987_p2 = por %p986_p1, %p985_p0 }
  0x41   :  { %p988_p3 = pnand %p987_p2, %p981_p13 }
  0x43   :  { %991 = shalt.err (!%p988_p3)
}
  0x44   :  { %68 = dma.hbm_to_vmem [thread:$0]  %s1176_s5, 2048, %s1107_s13, [#allocation9], %s1026_s1, %s1026_s1, %s1027_s28  }
  0x45   :  { %1014 = dma.done.wait [#allocation3], 128  }
  0x46   :  { %1015 = vsyncadd [#allocation3], 4294967168 }
  0x47   :  { %1016 = dma.done.wait [#allocation6], 6144  }
  0x48   :  { %1017 = vsyncadd [#allocation6], 4294961152 }
  0x49   :  { %1018 = dma.done.wait [#allocation9], 2048  }
  0x4a   :  { %1019 = vsyncadd [#allocation9], 4294965248  ;;  %v1030_v0 = vmov 0   ;;  %v811_v1 = vld [vmem:[#allocation5 + $0x4] ss:$8 sps:$4 sm:$0xff]   ;;  %v835_v27 = vld [vmem:[#allocation2] sm:$0xff]   ;;  %v106_v61 = vlaneseq }
  0x4b   :  { %234 = vmatprep.mubr.bf16.mxu0 %v1030_v0  ;;  %v813_v2 = vld [vmem:[#allocation5] ss:$8 sps:$4 sm:$0xff]   ;;  %202 = vmatprep.subr.bf16.mxu0 %v811_v1  ;;  %v814_v3 = vld [vmem:[#allocation5 + $0x14] ss:$8 sps:$4 sm:$0xff]   ;;  %v816_v4 = vld [vmem:[#allocation5 + $0x10] ss:$8 sps:$4 sm:$0xff]  }
  0x4c   :  { %203 = vmatpush1.bf16.msra.mxu0 %v813_v2  ;;  %v817_v5 = vld [vmem:[#allocation5 + $0x24] ss:$8 sps:$4 sm:$0xff]   ;;  %v819_v6 = vld [vmem:[#allocation5 + $0x20] ss:$8 sps:$4 sm:$0xff]   ;;  %v820_v7 = vld [vmem:[#allocation5 + $0x34] ss:$8 sps:$4 sm:$0xff]  }
  0x4d   :  { %204 = vmatprep.subr.bf16.mxu0 %v814_v3  ;;  %v822_v8 = vld [vmem:[#allocation5 + $0x30] ss:$8 sps:$4 sm:$0xff]   ;;  %v823_v9 = vld [vmem:[#allocation5 + $0x44] ss:$8 sps:$4 sm:$0xff]   ;;  %v838_v11 = vld [vmem:[#allocation7] ss:$8 sps:$4 sm:$0xff]  }
  0x4e   :  { %v836_v10 = vld [vmem:[#allocation7 + $0x4] ss:$8 sps:$4 sm:$0xff]   ;;  %v839_v12 = vld [vmem:[#allocation7 + $0x14] ss:$8 sps:$4 sm:$0xff]   ;;  %v825_v13 = vld [vmem:[#allocation5 + $0x40] ss:$8 sps:$4 sm:$0xff]  }
  0x4f   :  { %455 = vmatprep.subr.bf16.mxu1 %v836_v10  ;;  %v841_v14 = vld [vmem:[#allocation7 + $0x10] ss:$8 sps:$4 sm:$0xff]   ;;  %v826_v15 = vld [vmem:[#allocation5 + $0x54] ss:$8 sps:$4 sm:$0xff]   ;;  %v842_v16 = vld [vmem:[#allocation7 + $0x24] ss:$8 sps:$4 sm:$0xff]  }
  0x50   :  { %205 = vmatpush1.bf16.msra.mxu0 %v816_v4  ;;  %456 = vmatpush1.bf16.msra.mxu1 %v838_v11  ;;  %v828_v17 = vld [vmem:[#allocation5 + $0x50] ss:$8 sps:$4 sm:$0xff]   ;;  %v844_v18 = vld [vmem:[#allocation7 + $0x20] ss:$8 sps:$4 sm:$0xff]   ;;  %v829_v19 = vld [vmem:[#allocation5 + $0x64] ss:$8 sps:$4 sm:$0xff]  }
  0x51   :  { %206 = vmatprep.subr.bf16.mxu0 %v817_v5  ;;  %457 = vmatprep.subr.bf16.mxu1 %v839_v12  ;;  %v845_v20 = vld [vmem:[#allocation7 + $0x34] ss:$8 sps:$4 sm:$0xff]   ;;  %v831_v21 = vld [vmem:[#allocation5 + $0x60] ss:$8 sps:$4 sm:$0xff]   ;;  %v847_v22 = vld [vmem:[#allocation7 + $0x30] ss:$8 sps:$4 sm:$0xff]  }
  0x52   :  { %v832_v23 = vld [vmem:[#allocation5 + $0x74] ss:$8 sps:$4 sm:$0xff]   ;;  %v848_v24 = vld [vmem:[#allocation7 + $0x44] ss:$8 sps:$4 sm:$0xff]   ;;  %v834_v25 = vld [vmem:[#allocation5 + $0x70] ss:$8 sps:$4 sm:$0xff]  }
  0x53   :  { %v850_v26 = vld [vmem:[#allocation7 + $0x40] ss:$8 sps:$4 sm:$0xff]   ;;  %v851_v28 = vld [vmem:[#allocation7 + $0x54] ss:$8 sps:$4 sm:$0xff]   ;;  %v853_v29 = vld [vmem:[#allocation7 + $0x50] ss:$8 sps:$4 sm:$0xff]  }
  0x54   :  { %207 = vmatpush1.bf16.msra.mxu0 %v819_v6  ;;  %458 = vmatpush1.bf16.msra.mxu1 %v841_v14  ;;  %v854_v30 = vld [vmem:[#allocation7 + $0x64] ss:$8 sps:$4 sm:$0xff]   ;;  %v856_v31 = vld [vmem:[#allocation7 + $0x60] ss:$8 sps:$4 sm:$0xff]   ;;  %v857_v32 = vld [vmem:[#allocation7 + $0x74] ss:$8 sps:$4 sm:$0xff]  }
  0x55   :  { %208 = vmatprep.subr.bf16.mxu0 %v820_v7  ;;  %459 = vmatprep.subr.bf16.mxu1 %v842_v16  ;;  %v859_v33 = vld [vmem:[#allocation7 + $0x70] ss:$8 sps:$4 sm:$0xff]   ;;  %v860_v34 = vld [vmem:[#allocation7 + $0x84] ss:$8 sps:$4 sm:$0xff]   ;;  %v862_v35 = vld [vmem:[#allocation7 + $0x80] ss:$8 sps:$4 sm:$0xff]  }
  0x56   :  { %v863_v36 = vld [vmem:[#allocation7 + $0x94] ss:$8 sps:$4 sm:$0xff]   ;;  %v865_v37 = vld [vmem:[#allocation7 + $0x90] ss:$8 sps:$4 sm:$0xff]   ;;  %v866_v38 = vld [vmem:[#allocation7 + $0xa4] ss:$8 sps:$4 sm:$0xff]  }
  0x57   :  { %v868_v39 = vld [vmem:[#allocation7 + $0xa0] ss:$8 sps:$4 sm:$0xff]   ;;  %v869_v40 = vld [vmem:[#allocation7 + $0xb4] ss:$8 sps:$4 sm:$0xff]   ;;  %v871_v41 = vld [vmem:[#allocation7 + $0xb0] ss:$8 sps:$4 sm:$0xff]  }
  0x58   :  { %209 = vmatpush1.bf16.msra.mxu0 %v822_v8  ;;  %460 = vmatpush1.bf16.msra.mxu1 %v844_v18  ;;  %v872_v42 = vld [vmem:[#allocation7 + $0xc4] ss:$8 sps:$4 sm:$0xff]   ;;  %v874_v43 = vld [vmem:[#allocation7 + $0xc0] ss:$8 sps:$4 sm:$0xff]   ;;  %v875_v44 = vld [vmem:[#allocation7 + $0xd4] ss:$8 sps:$4 sm:$0xff]  }
  0x59   :  { %210 = vmatprep.subr.bf16.mxu0 %v823_v9  ;;  %461 = vmatprep.subr.bf16.mxu1 %v845_v20  ;;  %v877_v45 = vld [vmem:[#allocation7 + $0xd0] ss:$8 sps:$4 sm:$0xff]   ;;  %v878_v46 = vld [vmem:[#allocation7 + $0xe4] ss:$8 sps:$4 sm:$0xff]   ;;  %v880_v47 = vld [vmem:[#allocation7 + $0xe0] ss:$8 sps:$4 sm:$0xff]  }
  0x5a   :  { %v881_v48 = vld [vmem:[#allocation7 + $0xf4] ss:$8 sps:$4 sm:$0xff]   ;;  %v883_v49 = vld [vmem:[#allocation7 + $0xf0] ss:$8 sps:$4 sm:$0xff]   ;;  %v884_v50 = vld [vmem:[#allocation8 + $0x40] sm:$0xff]   ;;  %v107_v62 = vshrl.u32 %v106_v61, 7 }
  0x5b   :  { %v885_v51 = vld [vmem:[#allocation8] sm:$0xff]   ;;  %v886_v52 = vld [vmem:[#allocation8 + $0x48] sm:$0xff]   ;;  %v888_v54 = vld [vmem:[#allocation8 + $0x50] sm:$0xff]   ;;  %s1031_s18 = smov [#allocation10]  }
  0x5c   :  { %211 = vmatpush1.bf16.msra.mxu0 %v825_v13  ;;  %462 = vmatpush1.bf16.msra.mxu1 %v847_v22  ;;  %v887_v53 = vld [vmem:[#allocation8 + $0x8] sm:$0xff]   ;;  %v889_v55 = vld [vmem:[#allocation8 + $0x10] sm:$0xff]   ;;  %v890_v56 = vld [vmem:[#allocation8 + $0x58] sm:$0xff]   ;;  %v108_v63 = vsub.s32 0, %v107_v62  ;;  %v112_v1 = vsub.s32 1, %v107_v62  ;;  %s698_s19 = sshll.u32 %s1031_s18, 4  ;;  %s699_s19 = int_to_ptr.vmem [resolvable:$true] %s698_s19 }
  0x5d   :  { %212 = vmatprep.subr.bf16.mxu0 %v826_v15  ;;  %463 = vmatprep.subr.bf16.mxu1 %v848_v24  ;;  %v891_v57 = vld [vmem:[#allocation8 + $0x18] sm:$0xff]   ;;  %v892_v58 = vld [vmem:[#allocation8 + $0x60] sm:$0xff]   ;;  %v894_v60 = vld [vmem:[#allocation8 + $0x68] sm:$0xff]   ;;  %p997_p5 = scmp.lt.s32.totalorder %s699_s19, %s699_s19 }
  0x5e   :  { %v893_v59 = vld [vmem:[#allocation8 + $0x20] sm:$0xff]   ;;  %v104_v0 = vld [vmem:[%s1173_s2] sm:$0x3]  ;;  %v895_v18 = vld [vmem:[#allocation8 + $0x28] sm:$0xff]  }
  0x5f   :  { %v109_v2 = vrot.slane %v104_v0, %v108_v63  ;;  %v113_v3 = vrot.slane %v104_v0, %v112_v1  ;;  %v897_v20 = vld [vmem:[#allocation8 + $0x30] sm:$0xff]   ;;  %v899_v22 = vld [vmem:[#allocation8 + $0x38] sm:$0xff]  }
  0x60   :  { %213 = vmatpush1.bf16.msra.mxu0 %v828_v17  ;;  %464 = vmatpush1.bf16.msra.mxu1 %v850_v26 }
  0x61   :  { %214 = vmatprep.subr.bf16.mxu0 %v829_v19  ;;  %465 = vmatprep.subr.bf16.mxu1 %v851_v28  ;;  %v896_v19 = vld [vmem:[#allocation8 + $0x70] sm:$0xff]  }
  0x64   :  { %215 = vmatpush1.bf16.msra.mxu0 %v831_v21  ;;  %466 = vmatpush1.bf16.msra.mxu1 %v853_v29  ;;  %v898_v21 = vld [vmem:[#allocation8 + $0x78] sm:$0xff]  }
  0x65   :  { %216 = vmatprep.subr.bf16.mxu0 %v832_v23  ;;  %467 = vmatprep.subr.bf16.mxu1 %v854_v30  ;;  %v283_v23 = vld [vmem:[%s1175_s4] sm:$0x3] }
  0x66   :  { %v288_v24 = vrot.slane %v283_v23, %v108_v63 }
  0x68   :  { %217 = vmatpush1.bf16.msra.mxu0 %v834_v25  ;;  %468 = vmatpush1.bf16.msra.mxu1 %v856_v31  ;;  %v292_v25 = vrot.slane %v283_v23, %v112_v1 }
  0x69   :  { %469 = vmatprep.subr.bf16.mxu1 %v857_v32  ;;  %779 = vmatprep.subr.bf16.mxu0 %v884_v50 }
  0x6b   :  { %235 = vmatmul.mubr.bf16.vlgmr.msra.gmra.mrb[0].mxu0 %v835_v27 }
  0x6c   :  { %470 = vmatpush1.bf16.msra.mxu1 %v859_v33  ;;  %780 = vmatpush3.bf16.msra.mxu0 %v885_v51 }
  0x6d   :  { %471 = vmatprep.subr.bf16.mxu1 %v860_v34  ;;  %781 = vmatprep.subr.bf16.mxu0 %v886_v52 }
  0x70   :  { %472 = vmatpush1.bf16.msra.mxu1 %v862_v35  ;;  %782 = vmatpush3.bf16.msra.mxu0 %v887_v53 }
  0x71   :  { %473 = vmatprep.subr.bf16.mxu1 %v863_v36  ;;  %783 = vmatprep.subr.bf16.mxu0 %v888_v54 }
  0x74   :  { %474 = vmatpush1.bf16.msra.mxu1 %v865_v37  ;;  %784 = vmatpush3.bf16.msra.mxu0 %v889_v55 }
  0x75   :  { %475 = vmatprep.subr.bf16.mxu1 %v866_v38  ;;  %785 = vmatprep.subr.bf16.mxu0 %v890_v56 }
  0x78   :  { %476 = vmatpush1.bf16.msra.mxu1 %v868_v39  ;;  %786 = vmatpush3.bf16.msra.mxu0 %v891_v57 }
  0x79   :  { %477 = vmatprep.subr.bf16.mxu1 %v869_v40  ;;  %787 = vmatprep.subr.bf16.mxu0 %v892_v58 }
  0x7c   :  { %478 = vmatpush1.bf16.msra.mxu1 %v871_v41  ;;  %788 = vmatpush3.bf16.msra.mxu0 %v893_v59  ;;  %v761_v41 = vld [vmem:[%s1177_s6] ss:$0 sm:$0xff]  ;;  %s992_s6 = scalar_lea.vmem %s699_s19, 256 }
  0x7d   :  { %479 = vmatprep.subr.bf16.mxu1 %v872_v42  ;;  %789 = vmatprep.subr.bf16.mxu0 %v894_v60  ;;  %p993_p4 = scmp.ne.s32.totalorder %s699_s19, %s992_s6  ;;  %p998_p6 = scmp.lt.s32.totalorder %s992_s6, %s992_s6 }
  0x7f   :  { %p999_p7 = por %p998_p6, %p997_p5 }
  0x80   :  { %480 = vmatpush1.bf16.msra.mxu1 %v874_v43  ;;  %790 = vmatpush3.bf16.msra.mxu0 %v895_v18 }
  0x81   :  { %481 = vmatprep.subr.bf16.mxu1 %v875_v44  ;;  %791 = vmatprep.subr.bf16.mxu0 %v896_v19  ;;  %p1000_p8 = pnand %p999_p7, %p993_p4 }
  0x84   :  { %482 = vmatpush1.bf16.msra.mxu1 %v877_v45  ;;  %792 = vmatpush3.bf16.msra.mxu0 %v897_v20 }
  0x85   :  { %483 = vmatprep.subr.bf16.mxu1 %v878_v46  ;;  %793 = vmatprep.subr.bf16.mxu0 %v898_v21 }
  0x88   :  { %484 = vmatpush1.bf16.msra.mxu1 %v880_v47  ;;  %794 = vmatpush3.bf16.msra.mxu0 %v899_v22 }
  0x89   :  { %485 = vmatprep.subr.bf16.mxu1 %v881_v48 }
  0x8c   :  { %486 = vmatpush1.bf16.msra.mxu1 %v883_v49  ;;  %v778_v49 = vld [vmem:[%s1178_s7] ss:$0 sm:$0xff] }
 0x13e   :  { %v236_v4 = vpop.f32.mrb[0].mxu0 }
 0x13f   :  { %v237_v5 = vadd.f32 %v236_v4, %v109_v2  ;;  %v238_v6 = vpop.f32.mrb[1].mxu0 }
 0x140   :  { %v239_v7 = vadd.f32 %v238_v6, %v113_v3  ;;  %v240_v8 = vpop.f32.mrb[2].mxu0 }
 0x141   :  { %v241_v9 = vadd.f32 %v240_v8, %v109_v2  ;;  %v242_v10 = vpop.f32.mrb[3].mxu0  ;;  %v245_v12 = vmax.f32 %v237_v5, 0.0 }
 0x142   :  { %v243_v11 = vadd.f32 %v242_v10, %v113_v3  ;;  %v246_v14 = vmax.f32 %v239_v7, 0.0 }
 0x143   :  { %v247_v13 = vmax.f32 %v241_v9, 0.0 }
 0x144   :  { %v248_v15 = vmax.f32 %v243_v11, 0.0 }
 0x145   :  { %v249_v16 = vpack.c.bf16 %v247_v13, %v245_v12 }
 0x146   :  { %v250_v17 = vpack.c.bf16 %v248_v15, %v246_v14 }
 0x148   :  { %487 = vmatprep.mubr.bf16.mxu1 %v250_v17 }
 0x149   :  { %488 = vmatmul.mubr.bf16.vlgmr.msra.gmra.mrb[0].mxu1 %v249_v16 }
 0x21c   :  { %v489_v26 = vpop.f32.mrb[0].mxu1 }
 0x21d   :  { %v490_v27 = vadd.f32 %v489_v26, %v288_v24  ;;  %v491_v28 = vpop.f32.mrb[1].mxu1 }
 0x21e   :  { %v492_v29 = vadd.f32 %v491_v28, %v292_v25  ;;  %v493_v30 = vpop.f32.mrb[2].mxu1 }
 0x21f   :  { %v494_v31 = vadd.f32 %v493_v30, %v288_v24  ;;  %v495_v32 = vpop.f32.mrb[3].mxu1  ;;  %v498_v34 = vmax.f32 %v490_v27, 0.0 }
 0x220   :  { %v496_v33 = vadd.f32 %v495_v32, %v292_v25  ;;  %v499_v36 = vmax.f32 %v492_v29, 0.0 }
 0x221   :  { %v500_v35 = vmax.f32 %v494_v31, 0.0 }
 0x222   :  { %v501_v37 = vmax.f32 %v496_v33, 0.0 }
 0x223   :  { %v502_v38 = vpack.c.bf16 %v500_v35, %v498_v34 }
 0x224   :  { %v503_v39 = vpack.c.bf16 %v501_v37, %v499_v36 }
 0x226   :  { %671 = vmatprep.mubr.bf16.mxu0 %v503_v39 }
 0x227   :  { %672 = vmatmul.mubr.bf16.vlgmr.msra.gmra.mrb[4].mxu0 %v502_v38 }
 0x2fa   :  { %v795_v40 = vpop.f32.mrb[4].mxu0 }
 0x2fb   :  { %v796_v42 = vpop.f32.mrb[5].mxu0 }
 0x2fc   :  { %v797_v43 = vadd.f32 %v796_v42, %v795_v40  ;;  %v798_v44 = vpop.f32.mrb[6].mxu0 }
 0x2fd   :  { %v799_v45 = vpop.f32.mrb[7].mxu0 }
 0x2fe   :  { %v674_v46 = vadd.f32 %v797_v43, %v761_v41  ;;  %v800_v47 = vadd.f32 %v799_v45, %v798_v44 }
 0x300   :  { %900 = vtanh.f32 %v674_v46  ;;  %v677_v48 = vadd.f32 %v800_v47, %v761_v41 }
 0x302   :  { %902 = vtanh.f32 %v677_v48 }
 0x30a   :  { %v901_v50 = vpop.eup %900 }
 0x30b   :  { %v689_v51 = vmul.f32 %v901_v50, %v778_v49 }
 0x30c   :  { %v903_v52 = vpop.eup %902 }
 0x30d   :  { %v690_v53 = vmul.f32 %v903_v52, %v778_v49  ;;  %691 = vst [vmem:[#allocation10] sm:$0xff] %v689_v51 }
 0x30f   :  { %692 = vst [vmem:[#allocation10 + $0x8] sm:$0xff] %v690_v53 }
 0x310   :  { %1003 = shalt.err (!%p1000_p8)
}
 0x311   :  { %s1004_s7 = scalar_lea.hbm %s1179_s8, 256 }
 0x312   :  { %p1005_p9 = scmp.ne.s32.totalorder %s1179_s8, %s1004_s7  ;;  %p1008_p10 = scmp.lt.u32.totalorder %s1004_s7, %s1179_s8 }
 0x314   :  { %p1010_p11 = pnand %p1008_p10, %p1005_p9 }
 0x316   :  { %1013 = shalt.err (!%p1010_p11)
}
 0x317   :  { %704 = dma.vmem_to_hbm [thread:$0]  %s699_s19, 256, %s1179_s8, [#allocation4], %s1023_s15, %s1023_s15, %s1024_s16  }
 0x318   :  { %1020 = dma.done.wait [#allocation4], 256  }
 0x319   :  { %1021 = vsyncadd [#allocation4], 4294967040 }
 0x31a   :  { %708 = vsyncpa [#allocation3], 1 }
 0x31b   :  { %709 = vsyncpa [#allocation6], 1 }
 0x31c   :  { %710 = vsyncpa [#allocation9], 1 }
 0x31d   :  { %711 = vsyncpa [#allocation4], 1 }

</bundles_post_ra>
